<compile_context>
chip_gen: v5e
topology: v5e:2x2
jax: 0.10.0
libtpu: 0.0.40
codegen_flags: <defaults>
</compile_context>

<pallas_src>
import jax
import jax.numpy as jnp
from jax.experimental import pallas as pl
from jax.experimental.pallas import tpu as pltpu

NEG_SLOPE = 0.01  # F.leaky_relu default negative_slope


# ---------------------------------------------------------------------------
# Fused kernel: encoder -> embedding -> decoder -> (L_1st, L_2nd)
# ---------------------------------------------------------------------------
def _make_fused_kernel(num_enc, num_dec):
    n_layers = num_enc + num_dec

    def kernel(*refs):
        adjb_ref, adjm_ref, bmat_ref = refs[:3]
        param_refs = refs[3:3 + 2 * n_layers]          # wt_0, b_0, wt_1, b_1, ...
        l1_ref, l2_ref = refs[3 + 2 * n_layers:]

        # In-kernel casts (no-ops for f32 inputs; enables int8/bool adjacency inputs).
        adjb = adjb_ref[...].astype(jnp.float32)        # (B, node_size)
        adjm = adjm_ref[...].astype(jnp.float32)        # (B, B)
        bmat = bmat_ref[...].astype(jnp.float32)        # (B, node_size)

        t = adjb
        emb = None
        for li in range(n_layers):
            wt = param_refs[2 * li][...]                # (in, out)  bf16
            b = param_refs[2 * li + 1][...]             # (1, out)   f32
            y = jnp.dot(t.astype(wt.dtype), wt,
                        preferred_element_type=jnp.float32) + b
            t = jnp.maximum(y, NEG_SLOPE * y)           # leaky_relu (single VALU op)
            if li == num_enc - 1:
                emb = t                                 # (B, E), f32

        # ---- L_1st = sum_ij adj[i,j] * (||e_i||^2 - 2<e_i,e_j> + ||e_j||^2) ----
        emb_sq = emb * emb
        adjm_e = jnp.dot(adjm, emb, preferred_element_type=jnp.float32)     # (B, E)
        adjm_esq = jnp.dot(adjm, emb_sq, preferred_element_type=jnp.float32)
        norm_col = jnp.sum(emb_sq, axis=1, keepdims=True)                   # (B, 1)
        row_sum = jnp.sum(adjm, axis=1, keepdims=True)                      # (B, 1)
        term_i = jnp.sum(row_sum * norm_col)     # sum_ij adj[i,j] * ||e_i||^2
        term_c = jnp.sum(emb * adjm_e)           # sum_ij adj[i,j] * <e_i, e_j>
        term_j = jnp.sum(adjm_esq)               # sum_ij adj[i,j] * ||e_j||^2
        l1_ref[0, 0] = term_i - 2.0 * term_c + term_j

        # ---- L_2nd = sum(((adj_batch - t0) * b_mat)^2) ----
        diff = (adjb - t) * bmat
        l2_ref[0, 0] = jnp.sum(diff * diff)

    return kernel


# ---------------------------------------------------------------------------
# SDNE module (parameters initialized deterministically in-script)
# ---------------------------------------------------------------------------
class SDNEPallas:
    def __init__(self, node_size, hid_sizes, droput, alpha, key):
        assert len(hid_sizes) >= 2
        self.num_hids = len(hid_sizes)
        self.emb_size = hid_sizes[-1]
        self.droput = droput          # stored but unused in forward (as in PyTorch code)
        self.alpha = float(alpha)
        self.node_size = node_size

        enc_dims = [node_size] + list(hid_sizes)
        dec_in = [hid_sizes[self.num_hids - 1 - i] for i in range(self.num_hids - 1)]
        dec_out = [hid_sizes[self.num_hids - 2 - i] for i in range(self.num_hids - 1)]
        dec_in.append(hid_sizes[0])
        dec_out.append(node_size)

        dims = list(zip(enc_dims[:-1], enc_dims[1:])) + list(zip(dec_in, dec_out))
        self.num_enc = len(enc_dims) - 1
        self.num_dec = len(dec_in)

        keys = jax.random.split(key, len(dims))
        # Precompute W^T (in,out) bf16 and (1,out) f32 biases ONCE (hoisted out of forward).
        self.layers = []
        for k, (fan_in, fan_out) in zip(keys, dims):
            kw, kb = jax.random.split(k)
            scale = 1.0 / jnp.sqrt(jnp.float32(fan_in))
            w = jax.random.uniform(kw, (fan_out, fan_in), jnp.float32, -scale, scale)
            b = jax.random.uniform(kb, (fan_out,), jnp.float32, -scale, scale)
            self.layers.append((jnp.transpose(w).astype(jnp.bfloat16),
                                jnp.reshape(b, (1, fan_out))))

        kernel = _make_fused_kernel(self.num_enc, self.num_dec)
        alpha_f = self.alpha

        def fwd(adj_batch, adj_mat, b_mat, params):
            flat = [p for layer in params for p in layer]
            n_in = 3 + len(flat)
            # Size the scoped VMEM limit from the actual footprint (defaults are 16/32 MiB).
            in_bytes = sum(int(x.size) * x.dtype.itemsize
                           for x in (adj_batch, adj_mat, b_mat))
            in_bytes += sum(int(p.size) * p.dtype.itemsize for p in flat)
            vmem_limit = int(min(max(2 * in_bytes + (8 << 20), 16 << 20), 112 << 20))
            scalar = jax.ShapeDtypeStruct((1, 1), jnp.float32)
            l1, l2 = pl.pallas_call(
                kernel,
                out_shape=(scalar, scalar),
                in_specs=[pl.BlockSpec(memory_space=pltpu.MemorySpace.VMEM)] * n_in,
                out_specs=(pl.BlockSpec(memory_space=pltpu.MemorySpace.SMEM),
                           pl.BlockSpec(memory_space=pltpu.MemorySpace.SMEM)),
                compiler_params=pltpu.CompilerParams(vmem_limit_bytes=vmem_limit),
            )(adj_batch, adj_mat, b_mat, *flat)
            l1 = l1[0, 0]
            l2 = l2[0, 0]
            return l1, alpha_f * l2, l1 + alpha_f * l2

        self._fwd = jax.jit(fwd)   # traced once per input signature; no per-call rebuilds

    def forward(self, adj_batch, adj_mat, b_mat):
        return self._fwd(adj_batch, adj_mat, b_mat, self.layers)


# ---------------------------------------------------------------------------
# Pure-JAX reference (for correctness check; mirrors the bf16-weight math)
# ---------------------------------------------------------------------------
def reference_forward(model, adj_batch, adj_mat, b_mat):
    def lrelu(x):
        return jnp.where(x >= 0.0, x, NEG_SLOPE * x)

    t0 = adj_batch.astype(jnp.float32)
    emb = None
    for li, (wt, b2) in enumerate(model.layers):
        y = jnp.dot(t0.astype(wt.dtype), wt, preferred_element_type=jnp.float32) + b2
        t0 = lrelu(y)
        if li == model.num_enc - 1:
            emb = t0
    emb_norm = jnp.sum(emb * emb, axis=1, keepdims=True)
    gram = jnp.dot(emb, emb.T, preferred_element_type=jnp.float32,
                   precision=jax.lax.Precision.HIGHEST)
    l1 = jnp.sum(adj_mat * (emb_norm - 2.0 * gram + emb_norm.T))
    diff = (adj_batch - t0) * b_mat
    l2 = jnp.sum(diff * diff)
    return l1, model.alpha * l2, l1 + model.alpha * l2


# ---------------------------------------------------------------------------
if __name__ == "__main__":
    key = jax.random.PRNGKey(0)
    node_size = 256
    hid_sizes = [128, 64, 32]
    batch = 8
    alpha = 0.2

    k_model, k_adjb, k_adjm = jax.random.split(key, 3)
    model = SDNEPallas(node_size, hid_sizes, droput=0.3, alpha=alpha, key=k_model)

    adj_batch = (jax.random.uniform(k_adjb, (batch, node_size)) < 0.1).astype(jnp.float32)
    adj_mat = (jax.random.uniform(k_adjm, (batch, batch)) < 0.3).astype(jnp.float32)
    b_mat = jnp.where(adj_batch > 0, 10.0, 1.0).astype(jnp.float32)

    out = model.forward(adj_batch, adj_mat, b_mat)
    out = jax.block_until_ready(out)

    ref = reference_forward(model, adj_batch, adj_mat, b_mat)
    for got, want in zip(out, ref):
        g, w = float(got), float(want)
        assert abs(g - w) <= 2e-3 * max(1.0, abs(w)), (g, w)

    print("KERNEL_OK")
</pallas_src>

<mosaic_0001>
module attributes {stable_mosaic.version = 11 : i64} {
  func.func @kernel(%arg0: memref<8x256xf32, #tpu.memory_space<vmem>>, %arg1: memref<8x8xf32, #tpu.memory_space<vmem>>, %arg2: memref<8x256xf32, #tpu.memory_space<vmem>>, %arg3: memref<256x128xbf16, #tpu.memory_space<vmem>>, %arg4: memref<1x128xf32, #tpu.memory_space<vmem>>, %arg5: memref<128x64xbf16, #tpu.memory_space<vmem>>, %arg6: memref<1x64xf32, #tpu.memory_space<vmem>>, %arg7: memref<64x32xbf16, #tpu.memory_space<vmem>>, %arg8: memref<1x32xf32, #tpu.memory_space<vmem>>, %arg9: memref<32x64xbf16, #tpu.memory_space<vmem>>, %arg10: memref<1x64xf32, #tpu.memory_space<vmem>>, %arg11: memref<64x128xbf16, #tpu.memory_space<vmem>>, %arg12: memref<1x128xf32, #tpu.memory_space<vmem>>, %arg13: memref<128x256xbf16, #tpu.memory_space<vmem>>, %arg14: memref<1x256xf32, #tpu.memory_space<vmem>>, %arg15: memref<1x1xf32, #tpu.memory_space<smem>>, %arg16: memref<1x1xf32, #tpu.memory_space<smem>>) attributes {dimension_semantics = [], scalar_prefetch = 0 : i64, scratch_operands = 0 : i64, tpu.core_type = #tpu.core_type<tc>} {
    %c0 = arith.constant 0 : index
    %c0_0 = arith.constant 0 : index
    %0 = vector.load %arg0[%c0, %c0_0] : memref<8x256xf32, #tpu.memory_space<vmem>>, vector<8x256xf32>
    %c0_1 = arith.constant 0 : index
    %c0_2 = arith.constant 0 : index
    %1 = vector.load %arg1[%c0_1, %c0_2] : memref<8x8xf32, #tpu.memory_space<vmem>>, vector<8x8xf32>
    %c0_3 = arith.constant 0 : index
    %c0_4 = arith.constant 0 : index
    %2 = vector.load %arg2[%c0_3, %c0_4] : memref<8x256xf32, #tpu.memory_space<vmem>>, vector<8x256xf32>
    %c0_5 = arith.constant 0 : index
    %c0_6 = arith.constant 0 : index
    %3 = vector.load %arg3[%c0_5, %c0_6] : memref<256x128xbf16, #tpu.memory_space<vmem>>, vector<256x128xbf16>
    %c0_7 = arith.constant 0 : index
    %c0_8 = arith.constant 0 : index
    %4 = vector.load %arg4[%c0_7, %c0_8] : memref<1x128xf32, #tpu.memory_space<vmem>>, vector<1x128xf32>
    %5 = arith.truncf %0 : vector<8x256xf32> to vector<8x256xbf16>
    %cst = arith.constant dense<0.000000e+00> : vector<8x128xf32>
    %6 = tpu.matmul %5, %3, %cst {dimension_numbers = #tpu.dot_dimension_numbers<[1], [0], [0], [1], [0, 0, 1, 1], [], []>} : vector<8x256xbf16>, vector<256x128xbf16>, vector<8x128xf32> -> vector<8x128xf32>
    %7 = vector.broadcast %4 : vector<1x128xf32> to vector<8x128xf32>
    %8 = arith.addf %6, %7 : vector<8x128xf32>
    %cst_9 = arith.constant 0.00999999977 : f32
    %9 = vector.broadcast %cst_9 : f32 to vector<8x128xf32>
    %10 = arith.mulf %9, %8 : vector<8x128xf32>
    %11 = arith.maximumf %8, %10 : vector<8x128xf32>
    %c0_10 = arith.constant 0 : index
    %c0_11 = arith.constant 0 : index
    %12 = vector.load %arg5[%c0_10, %c0_11] : memref<128x64xbf16, #tpu.memory_space<vmem>>, vector<128x64xbf16>
    %c0_12 = arith.constant 0 : index
    %c0_13 = arith.constant 0 : index
    %13 = vector.load %arg6[%c0_12, %c0_13] : memref<1x64xf32, #tpu.memory_space<vmem>>, vector<1x64xf32>
    %14 = arith.truncf %11 : vector<8x128xf32> to vector<8x128xbf16>
    %cst_14 = arith.constant dense<0.000000e+00> : vector<8x64xf32>
    %15 = tpu.matmul %14, %12, %cst_14 {dimension_numbers = #tpu.dot_dimension_numbers<[1], [0], [0], [1], [0, 0, 1, 1], [], []>} : vector<8x128xbf16>, vector<128x64xbf16>, vector<8x64xf32> -> vector<8x64xf32>
    %16 = vector.broadcast %13 : vector<1x64xf32> to vector<8x64xf32>
    %17 = arith.addf %15, %16 : vector<8x64xf32>
    %cst_15 = arith.constant 0.00999999977 : f32
    %18 = vector.broadcast %cst_15 : f32 to vector<8x64xf32>
    %19 = arith.mulf %18, %17 : vector<8x64xf32>
    %20 = arith.maximumf %17, %19 : vector<8x64xf32>
    %c0_16 = arith.constant 0 : index
    %c0_17 = arith.constant 0 : index
    %21 = vector.load %arg7[%c0_16, %c0_17] : memref<64x32xbf16, #tpu.memory_space<vmem>>, vector<64x32xbf16>
    %c0_18 = arith.constant 0 : index
    %c0_19 = arith.constant 0 : index
    %22 = vector.load %arg8[%c0_18, %c0_19] : memref<1x32xf32, #tpu.memory_space<vmem>>, vector<1x32xf32>
    %23 = arith.truncf %20 : vector<8x64xf32> to vector<8x64xbf16>
    %cst_20 = arith.constant dense<0.000000e+00> : vector<8x32xf32>
    %24 = tpu.matmul %23, %21, %cst_20 {dimension_numbers = #tpu.dot_dimension_numbers<[1], [0], [0], [1], [0, 0, 1, 1], [], []>} : vector<8x64xbf16>, vector<64x32xbf16>, vector<8x32xf32> -> vector<8x32xf32>
    %25 = vector.broadcast %22 : vector<1x32xf32> to vector<8x32xf32>
    %26 = arith.addf %24, %25 : vector<8x32xf32>
    %cst_21 = arith.constant 0.00999999977 : f32
    %27 = vector.broadcast %cst_21 : f32 to vector<8x32xf32>
    %28 = arith.mulf %27, %26 : vector<8x32xf32>
    %29 = arith.maximumf %26, %28 : vector<8x32xf32>
    %c0_22 = arith.constant 0 : index
    %c0_23 = arith.constant 0 : index
    %30 = vector.load %arg9[%c0_22, %c0_23] : memref<32x64xbf16, #tpu.memory_space<vmem>>, vector<32x64xbf16>
    %c0_24 = arith.constant 0 : index
    %c0_25 = arith.constant 0 : index
    %31 = vector.load %arg10[%c0_24, %c0_25] : memref<1x64xf32, #tpu.memory_space<vmem>>, vector<1x64xf32>
    %32 = arith.truncf %29 : vector<8x32xf32> to vector<8x32xbf16>
    %cst_26 = arith.constant dense<0.000000e+00> : vector<8x64xf32>
    %33 = tpu.matmul %32, %30, %cst_26 {dimension_numbers = #tpu.dot_dimension_numbers<[1], [0], [0], [1], [0, 0, 1, 1], [], []>} : vector<8x32xbf16>, vector<32x64xbf16>, vector<8x64xf32> -> vector<8x64xf32>
    %34 = vector.broadcast %31 : vector<1x64xf32> to vector<8x64xf32>
    %35 = arith.addf %33, %34 : vector<8x64xf32>
    %cst_27 = arith.constant 0.00999999977 : f32
    %36 = vector.broadcast %cst_27 : f32 to vector<8x64xf32>
    %37 = arith.mulf %36, %35 : vector<8x64xf32>
    %38 = arith.maximumf %35, %37 : vector<8x64xf32>
    %c0_28 = arith.constant 0 : index
    %c0_29 = arith.constant 0 : index
    %39 = vector.load %arg11[%c0_28, %c0_29] : memref<64x128xbf16, #tpu.memory_space<vmem>>, vector<64x128xbf16>
    %c0_30 = arith.constant 0 : index
    %c0_31 = arith.constant 0 : index
    %40 = vector.load %arg12[%c0_30, %c0_31] : memref<1x128xf32, #tpu.memory_space<vmem>>, vector<1x128xf32>
    %41 = arith.truncf %38 : vector<8x64xf32> to vector<8x64xbf16>
    %cst_32 = arith.constant dense<0.000000e+00> : vector<8x128xf32>
    %42 = tpu.matmul %41, %39, %cst_32 {dimension_numbers = #tpu.dot_dimension_numbers<[1], [0], [0], [1], [0, 0, 1, 1], [], []>} : vector<8x64xbf16>, vector<64x128xbf16>, vector<8x128xf32> -> vector<8x128xf32>
    %43 = vector.broadcast %40 : vector<1x128xf32> to vector<8x128xf32>
    %44 = arith.addf %42, %43 : vector<8x128xf32>
    %cst_33 = arith.constant 0.00999999977 : f32
    %45 = vector.broadcast %cst_33 : f32 to vector<8x128xf32>
    %46 = arith.mulf %45, %44 : vector<8x128xf32>
    %47 = arith.maximumf %44, %46 : vector<8x128xf32>
    %c0_34 = arith.constant 0 : index
    %c0_35 = arith.constant 0 : index
    %48 = vector.load %arg13[%c0_34, %c0_35] : memref<128x256xbf16, #tpu.memory_space<vmem>>, vector<128x256xbf16>
    %c0_36 = arith.constant 0 : index
    %c0_37 = arith.constant 0 : index
    %49 = vector.load %arg14[%c0_36, %c0_37] : memref<1x256xf32, #tpu.memory_space<vmem>>, vector<1x256xf32>
    %50 = arith.truncf %47 : vector<8x128xf32> to vector<8x128xbf16>
    %cst_38 = arith.constant dense<0.000000e+00> : vector<8x256xf32>
    %51 = tpu.matmul %50, %48, %cst_38 {dimension_numbers = #tpu.dot_dimension_numbers<[1], [0], [0], [1], [0, 0, 1, 1], [], []>} : vector<8x128xbf16>, vector<128x256xbf16>, vector<8x256xf32> -> vector<8x256xf32>
    %52 = vector.broadcast %49 : vector<1x256xf32> to vector<8x256xf32>
    %53 = arith.addf %51, %52 : vector<8x256xf32>
    %cst_39 = arith.constant 0.00999999977 : f32
    %54 = vector.broadcast %cst_39 : f32 to vector<8x256xf32>
    %55 = arith.mulf %54, %53 : vector<8x256xf32>
    %56 = arith.maximumf %53, %55 : vector<8x256xf32>
    %57 = arith.mulf %29, %29 : vector<8x32xf32>
    %cst_40 = arith.constant dense<0.000000e+00> : vector<8x32xf32>
    %58 = tpu.matmul %1, %29, %cst_40 {dimension_numbers = #tpu.dot_dimension_numbers<[1], [0], [0], [1], [0, 0, 1, 1], [], []>} : vector<8x8xf32>, vector<8x32xf32>, vector<8x32xf32> -> vector<8x32xf32>
    %cst_41 = arith.constant dense<0.000000e+00> : vector<8x32xf32>
    %59 = tpu.matmul %1, %57, %cst_41 {dimension_numbers = #tpu.dot_dimension_numbers<[1], [0], [0], [1], [0, 0, 1, 1], [], []>} : vector<8x8xf32>, vector<8x32xf32>, vector<8x32xf32> -> vector<8x32xf32>
    %cst_42 = arith.constant dense<0.000000e+00> : vector<8xf32>
    %60 = vector.multi_reduction <add>, %57, %cst_42 [1] : vector<8x32xf32> to vector<8xf32>
    %61 = vector.shape_cast %60 : vector<8xf32> to vector<8x1xf32>
    %cst_43 = arith.constant dense<0.000000e+00> : vector<8xf32>
    %62 = vector.multi_reduction <add>, %1, %cst_43 [1] : vector<8x8xf32> to vector<8xf32>
    %63 = vector.shape_cast %62 : vector<8xf32> to vector<8x1xf32>
    %64 = arith.mulf %63, %61 : vector<8x1xf32>
    %65 = vector.shape_cast %64 : vector<8x1xf32> to vector<1x8x1xf32>
    %cst_44 = arith.constant dense<0.000000e+00> : vector<1xf32>
    %66 = vector.multi_reduction <add>, %65, %cst_44 [1, 2] : vector<1x8x1xf32> to vector<1xf32>
    %67 = vector.shape_cast %66 : vector<1xf32> to vector<1x1x1xf32>
    %68 = vector.extract %67[0, 0, 0] : f32 from vector<1x1x1xf32>
    %69 = arith.mulf %29, %58 : vector<8x32xf32>
    %70 = vector.shape_cast %69 : vector<8x32xf32> to vector<1x8x32xf32>
    %cst_45 = arith.constant dense<0.000000e+00> : vector<1xf32>
    %71 = vector.multi_reduction <add>, %70, %cst_45 [1, 2] : vector<1x8x32xf32> to vector<1xf32>
    %72 = vector.shape_cast %71 : vector<1xf32> to vector<1x1x1xf32>
    %73 = vector.extract %72[0, 0, 0] : f32 from vector<1x1x1xf32>
    %74 = vector.shape_cast %59 : vector<8x32xf32> to vector<1x8x32xf32>
    %cst_46 = arith.constant dense<0.000000e+00> : vector<1xf32>
    %75 = vector.multi_reduction <add>, %74, %cst_46 [1, 2] : vector<1x8x32xf32> to vector<1xf32>
    %76 = vector.shape_cast %75 : vector<1xf32> to vector<1x1x1xf32>
    %77 = vector.extract %76[0, 0, 0] : f32 from vector<1x1x1xf32>
    %cst_47 = arith.constant 2.000000e+00 : f32
    %78 = arith.mulf %cst_47, %73 : f32
    %79 = arith.subf %68, %78 : f32
    %80 = arith.addf %79, %77 : f32
    %c0_48 = arith.constant 0 : index
    %c0_49 = arith.constant 0 : index
    %81 = memref.load %arg15[%c0_48, %c0_49] : memref<1x1xf32, #tpu.memory_space<smem>>
    memref.store %80, %arg15[%c0_48, %c0_49] : memref<1x1xf32, #tpu.memory_space<smem>>
    %82 = arith.subf %0, %56 : vector<8x256xf32>
    %83 = arith.mulf %82, %2 : vector<8x256xf32>
    %84 = arith.mulf %83, %83 : vector<8x256xf32>
    %85 = vector.shape_cast %84 : vector<8x256xf32> to vector<1x8x256xf32>
    %cst_50 = arith.constant dense<0.000000e+00> : vector<1xf32>
    %86 = vector.multi_reduction <add>, %85, %cst_50 [1, 2] : vector<1x8x256xf32> to vector<1xf32>
    %87 = vector.shape_cast %86 : vector<1xf32> to vector<1x1x1xf32>
    %88 = vector.extract %87[0, 0, 0] : f32 from vector<1x1x1xf32>
    %c0_51 = arith.constant 0 : index
    %c0_52 = arith.constant 0 : index
    %89 = memref.load %arg16[%c0_51, %c0_52] : memref<1x1xf32, #tpu.memory_space<smem>>
    memref.store %88, %arg16[%c0_51, %c0_52] : memref<1x1xf32, #tpu.memory_space<smem>>
    return
  }
}

</mosaic_0001>

<bundles_post_ra>
// kernel: fwd.1
= control target key start
LH: loop header
LB: loop body
LE: loop exit
PB: predicated region body
PF: predicated region fallthrough
CT: control target
= control target key end

     0   :  { %s1324_s0 = inlined_call_operand.vmem [shape: f32[8,256], index: 0, kind: input, shape index: {}]   ;;  %s1325_s1 = inlined_call_operand.vmem [shape: f32[8,8], index: 1, kind: input, shape index: {}]   ;;  %s1326_s2 = inlined_call_operand.vmem [shape: f32[8,256], index: 2, kind: input, shape index: {}]   ;;  %s1327_s3 = inlined_call_operand.hbm [shape: bf16[256,128], index: 3, kind: input, shape index: {}]   ;;  %s1328_s4 = inlined_call_operand.vmem [shape: f32[1,128], index: 4, kind: input, shape index: {}]   ;;  %s1329_s5 = inlined_call_operand.vmem [shape: bf16[128,64], index: 5, kind: input, shape index: {}]   ;;  %s1330_s6 = inlined_call_operand.vmem [shape: f32[1,64], index: 6, kind: input, shape index: {}]   ;;  %s1331_s7 = inlined_call_operand.vmem [shape: bf16[64,32], index: 7, kind: input, shape index: {}]   ;;  %s1332_s8 = inlined_call_operand.vmem [shape: f32[1,32], index: 8, kind: input, shape index: {}]   ;;  %s1333_s9 = inlined_call_operand.vmem [shape: bf16[32,64], index: 9, kind: input, shape index: {}]   ;;  %s1334_s10 = inlined_call_operand.vmem [shape: f32[1,64], index: 10, kind: input, shape index: {}]   ;;  %s1335_s11 = inlined_call_operand.vmem [shape: bf16[64,128], index: 11, kind: input, shape index: {}]   ;;  %s1336_s12 = inlined_call_operand.vmem [shape: f32[1,128], index: 12, kind: input, shape index: {}]   ;;  %s1337_s13 = inlined_call_operand.hbm [shape: bf16[128,256], index: 13, kind: input, shape index: {}]   ;;  %s1338_s14 = inlined_call_operand.vmem [shape: f32[1,256], index: 14, kind: input, shape index: {}]   ;;  %s1339_s15 = inlined_call_operand.hbm [shape: f32[1,1], index: 15, kind: output, shape index: {0}]   ;;  %s1340_s16 = inlined_call_operand.hbm [shape: f32[1,1], index: 16, kind: output, shape index: {1}]  }
   0x1   :  { %1342 = sst [smem:[#allocation14_spill]] %s1324_s0 }
   0x2   :  { %22 = vsyncpa [#allocation3], 0 }
   0x3   :  { %23 = vsyncpa [#allocation6], 0 }
   0x4   :  { %24 = vsyncpa [#allocation4], 0 }
   0x5   :  { %25 = vsyncpa [#allocation9], 0  ;;  %s36_s23 = sshll.u32 %s1327_s3, 4  ;;  %s1116_s24 = smov [#allocation2]   ;;  %s37_s23 = int_to_ptr.hbm [resolvable:$true] %s36_s23 }
   0x6   :  { %s38_s25 = sshll.u32 %s1116_s24, 4  ;;  %s67_s28 = sshll.u32 %s1337_s13, 4  ;;  %s39_s25 = int_to_ptr.vmem [resolvable:$true] %s38_s25  ;;  %s68_s28 = int_to_ptr.hbm [resolvable:$true] %s67_s28 }
   0x7   :  { %s1117_s29 = smov 64   ;;  %s1118_s30 = smov 4  }
   0x8   :  { %44 = dma.hbm_to_vmem [thread:$0]  %s37_s23, 2048, %s39_s25, [#allocation3], %s1117_s29, %s1117_s29, %s1118_s30  }
   0x9   :  { %s1119_s0 = smov [#allocation5]   ;;  %s1120_s18 = smov 128  }
   0xa   :  { %s69_s17 = sshll.u32 %s1119_s0, 4  ;;  %s1121_s19 = smov 8   ;;  %s70_s17 = int_to_ptr.vmem [resolvable:$true] %s69_s17 }
   0xb   :  { %75 = dma.hbm_to_vmem [thread:$0]  %s68_s28, 2048, %s70_s17, [#allocation6], %s1120_s18, %s1120_s18, %s1121_s19  }
   0xc   :  { %1108 = dma.done.wait [#allocation3], 2048  }
   0xd   :  { %1109 = vsyncadd [#allocation3], 4294965248 }
   0xe   :  { %1110 = dma.done.wait [#allocation6], 2048  }
   0xf   :  { %1111 = vsyncadd [#allocation6], 4294965248  ;;  %v972_v0 = vld [vmem:[#allocation2 + $0x38] sm:$0xff]  ;;  %v971_v2 = vld [vmem:[#allocation2 + $0x30] sm:$0xff]  ;;  %s1343_s30 = sld [smem:[#allocation14_spill]]  ;;  %vm375_vm0 = vcmask 523264  }
  0x10   :  { %v980_v1 = vld [vmem:[#allocation2 + $0x78] sm:$0xff]  ;;  %226 = vmatpush.bf16.msra.mxu0 %v972_v0  ;;  %v979_v3 = vld [vmem:[#allocation2 + $0x70] sm:$0xff]  ;;  %v970_v4 = vld [vmem:[#allocation2 + $0x28] sm:$0xff]  ;;  %vm415_vm1 = vcmask 261120   ;;  %vm623_vm2 = vcmask 64512   ;;  %vm674_vm3 = vcmask 7168  }
  0x11   :  { %239 = vmatpush.bf16.msra.mxu1 %v980_v1  ;;  %v978_v5 = vld [vmem:[#allocation2 + $0x68] sm:$0xff]  ;;  %v988_v6 = vld [vmem:[%s1329_s5 + $0x38] sm:$0xff]  ;;  %v987_v7 = vld [vmem:[%s1329_s5 + $0x30] sm:$0xff]  ;;  %s743_s20 = sshll.u32 %s1340_s16, 4  ;;  %s1123_s22 = smov [#allocation8]   ;;  %s744_s20 = int_to_ptr.hbm [resolvable:$true] %s743_s20 }
  0x12   :  { %323 = vmatpush.bf16.msra.mxu2 %v988_v6  ;;  %v969_v8 = vld [vmem:[#allocation2 + $0x20] sm:$0xff]  ;;  %v986_v10 = vld [vmem:[%s1329_s5 + $0x28] sm:$0xff]  ;;  %v968_v11 = vld [vmem:[#allocation2 + $0x18] sm:$0xff] }
  0x13   :  { %v977_v9 = vld [vmem:[#allocation2 + $0x60] sm:$0xff]  ;;  %v976_v12 = vld [vmem:[#allocation2 + $0x58] sm:$0xff]  ;;  %v967_v14 = vld [vmem:[#allocation2 + $0x10] sm:$0xff] }
  0x14   :  { %227 = vmatpush.bf16.msra.mxu0 %v971_v2  ;;  %v985_v13 = vld [vmem:[%s1329_s5 + $0x20] sm:$0xff]  ;;  %v975_v15 = vld [vmem:[#allocation2 + $0x50] sm:$0xff]  ;;  %v984_v16 = vld [vmem:[%s1329_s5 + $0x18] sm:$0xff] }
  0x15   :  { %240 = vmatpush.bf16.msra.mxu1 %v979_v3  ;;  %v966_v17 = vld [vmem:[#allocation2 + $0x8] sm:$0xff]  ;;  %v965_v19 = vld [vmem:[#allocation2] sm:$0xff]  ;;  %v983_v25 = vld [vmem:[%s1329_s5 + $0x10] sm:$0xff] }
  0x16   :  { %324 = vmatpush.bf16.msra.mxu2 %v987_v7  ;;  %v974_v18 = vld [vmem:[#allocation2 + $0x48] sm:$0xff]  ;;  %v973_v20 = vld [vmem:[#allocation2 + $0x40] sm:$0xff]  ;;  %v992_v28 = vld [vmem:[%s1331_s7 + $0x18] sm:$0xff] }
  0x17   :  { %v1233_v21 = vld [vmem:[%s1343_s30] sm:$0xff]  ;;  %v1238_v22 = vld [vmem:[%s1343_s30 + $0x8] sm:$0xff]  ;;  %383 = vmatpush.bf16.msra.mxu3 %v992_v28  ;;  %v991_v29 = vld [vmem:[%s1331_s7 + $0x10] sm:$0xff] }
  0x18   :  { %228 = vmatpush.bf16.msra.mxu0 %v970_v4  ;;  %v125_v23 = vpack.c.bf16 %v1233_v21, %v1233_v21  ;;  %v126_v24 = vpack.c.bf16 %v1238_v22, %v1238_v22  ;;  %v982_v26 = vld [vmem:[%s1329_s5 + $0x8] sm:$0xff]  ;;  %v981_v27 = vld [vmem:[%s1329_s5] sm:$0xff]  ;;  %v998_v62 = vld [vmem:[%s1335_s11 + $0x18] sm:$0xff] }
  0x19   :  { %241 = vmatpush.bf16.msra.mxu1 %v978_v5  ;;  %v1031_v30 = vld [vmem:[%s1328_s4] ss:$0 sm:$0xff]  ;;  %v990_v40 = vld [vmem:[%s1331_s7 + $0x8] sm:$0xff]  ;;  %v997_v63 = vld [vmem:[%s1335_s11 + $0x10] sm:$0xff] }
  0x1a   :  { %325 = vmatpush.bf16.msra.mxu2 %v986_v10  ;;  %v989_v41 = vld [vmem:[%s1331_s7] sm:$0xff]  ;;  %v994_v42 = vld [vmem:[%s1333_s9 + $0x8] sm:$0xff]  ;;  %v957_v5 = vld [vmem:[#allocation5 + $0x70] sm:$0xf] }
  0x1b   :  { %384 = vmatpush.bf16.msra.mxu3 %v991_v29  ;;  %v1032_v43 = vld [vmem:[%s1330_s6] ss:$0 sm:$0xff]  ;;  %v996_v0 = vld [vmem:[%s1335_s11 + $0x8] sm:$0xff]  ;;  %v1014_v6 = vld [vmem:[#allocation5 + $0x74] sm:$0xf0]  ;;  %s734_s6 = sshll.u32 %s1339_s15, 4  ;;  %s735_s6 = int_to_ptr.hbm [resolvable:$true] %s734_s6 }
  0x1c   :  { %229 = vmatpush.bf16.msra.mxu0 %v969_v8  ;;  %v993_v50 = vld [vmem:[%s1333_s9] sm:$0xff]  ;;  %v1013_v7 = vld [vmem:[#allocation5 + $0x74] sm:$0xf]  ;;  %v958_v8 = vor.u32 %v1014_v6, %v957_v5  ;;  %s1122_s9 = smov [#allocation7]  }
  0x1d   :  { %242 = vmatpush.bf16.msra.mxu1 %v977_v9  ;;  %v1033_v51 = vld [vmem:[%s1332_s8] ss:$0 sm:$0xff]  ;;  %v959_v9 = vld [vmem:[#allocation5 + $0x78] sm:$0xf0]  ;;  %v1011_v28 = vld [vmem:[#allocation5 + $0x64] sm:$0xf] }
  0x1e   :  { %326 = vmatpush.bf16.msra.mxu2 %v985_v13  ;;  %v89_v60 = vld [vmem:[%s1325_s1] sm:$0xff] }
  0x1f   :  { %385 = vmatpush.bf16.msra.mxu3 %v990_v40  ;;  %v670_v61 = vsel %vm623_vm2, %v89_v60, 0.0  ;;  %v995_v1 = vld [vmem:[%s1335_s11] sm:$0xff] }
  0x20   :  { %230 = vmatpush.bf16.msra.mxu0 %v968_v11  ;;  %v962_v11 = vor.u32 %v1013_v7, %v959_v9  ;;  %v1007_v40 = vld [vmem:[#allocation5 + $0x44] sm:$0xf] }
  0x21   :  { %243 = vmatpush.bf16.msra.mxu1 %v976_v12  ;;  %v1034_v12 = vld [vmem:[%s1334_s10] ss:$0 sm:$0xff] }
  0x22   :  { %327 = vmatpush.bf16.msra.mxu2 %v984_v16 }
  0x23   :  { %386 = vmatpush.bf16.msra.mxu3 %v989_v41  ;;  %v935_v41 = vld [vmem:[#allocation5 + $0x48] sm:$0xf0] }
  0x24   :  { %231 = vmatpush.bf16.msra.mxu0 %v967_v14 }
  0x25   :  { %244 = vmatpush.bf16.msra.mxu1 %v975_v15 }
  0x26   :  { %328 = vmatpush.bf16.msra.mxu2 %v983_v25 }
  0x27   :  { %425 = vmatpush.bf16.msrb.mxu3 %v994_v42 }
  0x28   :  { %232 = vmatpush.bf16.msra.mxu0 %v966_v17 }
  0x29   :  { %245 = vmatpush.bf16.msra.mxu1 %v974_v18 }
  0x2a   :  { %329 = vmatpush.bf16.msra.mxu2 %v982_v26  ;;  %v949_v26 = vld [vmem:[#allocation5 + $0x60] sm:$0xf] }
  0x2b   :  { %426 = vmatpush.bf16.msrb.mxu3 %v993_v50  ;;  %v1004_v50 = vld [vmem:[#allocation5 + $0x24] sm:$0xf0] }
  0x2c   :  { %233 = vmatpush.bf16.msra.mxu0 %v965_v19 }
  0x2d   :  { %246 = vmatpush.bf16.msra.mxu1 %v973_v20 }
  0x2e   :  { %330 = vmatpush.bf16.msra.mxu2 %v981_v27  ;;  %v1012_v27 = vld [vmem:[#allocation5 + $0x64] sm:$0xf0] }
  0x2f   :  { %234 = vmatmul.bf16.vlgmr.msra.gmra.mxu0 %v125_v23  ;;  %v950_v29 = vor.u32 %v1012_v27, %v949_v26 }
  0x30   :  { %247 = vmatmul.bf16.vlgmr.msra.gmra.mxu1 %v126_v24  ;;  %478 = vmatpush.bf16.msrb.mxu0 %v998_v62  ;;  %v901_v62 = vld [vmem:[#allocation5] sm:$0xf] }
  0x31   :  { %592 = vmatpush.bf16.msrb.mxu1 %v958_v8 }
  0x32   :  { %605 = vmatpush.bf16.msrb.mxu2 %v962_v11  ;;  %v1035_v11 = vld [vmem:[%s1336_s12] ss:$0 sm:$0xff] }
  0x34   :  { %479 = vmatpush.bf16.msrb.mxu0 %v997_v63  ;;  %v1000_v63 = vld [vmem:[#allocation5 + $0x4] sm:$0xf0] }
  0x35   :  { %593 = vmatpush.bf16.msrb.mxu1 %v950_v29 }
  0x38   :  { %480 = vmatpush.bf16.msrb.mxu0 %v996_v0  ;;  %v999_v0 = vld [vmem:[#allocation5 + $0x4] sm:$0xf] }
  0x3c   :  { %481 = vmatpush.bf16.msrb.mxu0 %v995_v1  ;;  %v902_v1 = vor.u32 %v1000_v63, %v901_v62 }
  0xac   :  { %v235_v31 = vpop.f32.mrf.mxu0 }
  0xad   :  { %v248_v32 = vpop.f32.mrf.mxu1  ;;  %v236_v33 = vadd.f32 %v1031_v30, %v235_v31  ;;  %v951_v30 = vld [vmem:[#allocation5 + $0x68] sm:$0xf0] }
  0xae   :  { %v954_v31 = vor.u32 %v1011_v28, %v951_v30 }
  0xaf   :  { %v249_v34 = vadd.f32 %v248_v32, %v236_v33  ;;  %v941_v32 = vld [vmem:[#allocation5 + $0x50] sm:$0xf]  ;;  %v1010_v33 = vld [vmem:[#allocation5 + $0x54] sm:$0xf0] }
  0xb0   :  { %606 = vmatpush.bf16.msrb.mxu2 %v954_v31 }
  0xb1   :  { %v252_v35 = vmul.f32 0.01, %v249_v34 }
  0xb3   :  { %v253_v36 = vmax.f32 %v249_v34, %v252_v35  ;;  %v1009_v34 = vld [vmem:[#allocation5 + $0x54] sm:$0xf]  ;;  %v942_v35 = vor.u32 %v1010_v33, %v941_v32 }
  0xb4   :  { %v237_v37 = vpop.f32.mrf.mxu0 }
  0xb5   :  { %v250_v38 = vpop.f32.mrf.mxu1  ;;  %v271_v39 = vpack.c.bf16 %v253_v36, %v253_v36  ;;  %v943_v36 = vld [vmem:[#allocation5 + $0x58] sm:$0xf0]  ;;  %v933_v37 = vld [vmem:[#allocation5 + $0x40] sm:$0xf]  ;;  %594 = vmatpush.bf16.msrb.mxu1 %v942_v35 }
  0xb6   :  { %v1008_v38 = vld [vmem:[#allocation5 + $0x44] sm:$0xf0] }
  0xb7   :  { %331 = vmatmul.bf16.vlgmr.msra.gmra.mxu2 %v271_v39  ;;  %v946_v39 = vor.u32 %v1009_v34, %v943_v36  ;;  %v934_v42 = vor.u32 %v1008_v38, %v933_v37  ;;  %v505_v34 = vld [vmem:[%s1338_s14] sm:$0x3] }
  0xb8   :  { %v508_v35 = vperm.slane %v505_v34, 0 }
  0xb9   :  { %607 = vmatpush.bf16.msrb.mxu2 %v946_v39  ;;  %595 = vmatpush.bf16.msrb.mxu1 %v934_v42  ;;  %v509_v39 = vperm.slane %v505_v34, 1 }
 0x13a   :  { %v332_v44 = vpop.f32.mrf.mxu2 }
 0x13b   :  { %v333_v45 = vadd.f32 %v1032_v43, %v332_v44  ;;  %v938_v43 = vor.u32 %v1007_v40, %v935_v41  ;;  %v925_v44 = vld [vmem:[#allocation5 + $0x30] sm:$0xf] }
 0x13d   :  { %v336_v46 = vmul.f32 0.01, %v333_v45  ;;  %608 = vmatpush.bf16.msrb.mxu2 %v938_v43 }
 0x13f   :  { %v337_v47 = vmax.f32 %v333_v45, %v336_v46  ;;  %v1006_v45 = vld [vmem:[#allocation5 + $0x34] sm:$0xf0]  ;;  %v1005_v46 = vld [vmem:[#allocation5 + $0x34] sm:$0xf] }
 0x141   :  { %v347_v48 = vpack.c.bf16 %v337_v47, %v337_v47  ;;  %v926_v47 = vor.u32 %v1006_v45, %v925_v44 }
 0x142   :  { %v334_v49 = vpop.f32.mrf.mxu2 }
 0x143   :  { %872 = vmatmul.msk.bf16.vlgmr.msra.gmra.mxu3 %vm375_vm0, %v347_v48  ;;  %v927_v48 = vld [vmem:[#allocation5 + $0x38] sm:$0xf0]  ;;  %v917_v49 = vld [vmem:[#allocation5 + $0x20] sm:$0xf]  ;;  %596 = vmatpush.bf16.msrb.mxu1 %v926_v47 }
 0x1c6   :  { %v388_v52 = vpop.f32.mrf.mxu3 }
 0x1c7   :  { %v389_v53 = vadd.f32 %v1033_v51, %v388_v52  ;;  %v930_v51 = vor.u32 %v1005_v46, %v927_v48  ;;  %v1003_v52 = vld [vmem:[#allocation5 + $0x24] sm:$0xf]  ;;  %v91_v48 = vld [vmem:[%s1326_s2 + $0x8] sm:$0xff] }
 0x1c8   :  { %v90_v46 = vld [vmem:[%s1326_s2] sm:$0xff] }
 0x1c9   :  { %v392_v54 = vmul.f32 0.01, %v389_v53  ;;  %609 = vmatpush.bf16.msrb.mxu2 %v930_v51 }
 0x1cb   :  { %v393_v55 = vmax.f32 %v389_v53, %v392_v54  ;;  %v919_v53 = vld [vmem:[#allocation5 + $0x28] sm:$0xf0]  ;;  %v918_v54 = vor.u32 %v1004_v50, %v917_v49 }
 0x1cd   :  { %642 = vmatpush.msra.mxu3 %v393_v55  ;;  %v399_v56 = vpack.c.bf16 %v393_v55, %v393_v55  ;;  %v622_v57 = vmul.f32 %v393_v55, %v393_v55  ;;  %597 = vmatpush.bf16.msrb.mxu1 %v918_v54 }
 0x1ce   :  { %v390_v58 = vpop.f32.mrf.mxu3 }
 0x1cf   :  { %881 = vmatmul.msk.bf16.vlgmr.msrb.gmra.mxu3 %vm415_vm1, %v399_v56  ;;  %v667_v59 = vsel %vm415_vm1, %v622_v57, 0.0  ;;  %v909_v56 = vld [vmem:[#allocation5 + $0x10] sm:$0xf]  ;;  %v1001_v58 = vld [vmem:[#allocation5 + $0x14] sm:$0xf] }
 0x1d0   :  { %662 = vmatpush.msrb.mxu3 %v622_v57  ;;  %668 = vadd.xlane.f32.xlu0 %v667_v59  ;;  %v1002_v57 = vld [vmem:[#allocation5 + $0x14] sm:$0xf0] }
 0x1d1   :  { %v910_v59 = vor.u32 %v1002_v57, %v909_v56 }
 0x1d3   :  { %598 = vmatpush.bf16.msrb.mxu1 %v910_v59 }
 0x1d7   :  { %599 = vmatpush.bf16.msrb.mxu1 %v902_v1 }
 0x1d8   :  { %671 = vadd.xlane.f32.xlu0 %v670_v61 }
 0x1df   :  { %963 = vmatmul.msk.f32.vlgmr.msra.gmra.mxu3 %vm623_vm2, %v89_v60 }
 0x1e7   :  { %964 = vmatmul.msk.f32.vlgmr.msrb.gmra.mxu3 %vm623_vm2, %v89_v60  ;;  %v911_v60 = vld [vmem:[#allocation5 + $0x18] sm:$0xf0] }
 0x1e8   :  { %v914_v61 = vor.u32 %v1001_v58, %v911_v60 }
 0x243   :  { %v669_v2 = vpop.xlane.xlu0 %668 }
 0x24b   :  { %v672_v3 = vpop.xlane.xlu0 %671 }
 0x24c   :  { %v673_v4 = vmul.f32 %v672_v3, %v669_v2  ;;  %v903_v2 = vld [vmem:[#allocation5 + $0x8] sm:$0xf0] }
 0x24d   :  { %v906_v3 = vor.u32 %v999_v0, %v903_v2 }
 0x24e   :  { %v675_v10 = vsel %vm674_vm3, %v673_v4, 0.0 }
 0x24f   :  { %676 = vadd.xlane.f32.xlu1 %v675_v10 }
 0x252   :  { %v428_v13 = vpop.f32.mrf.mxu3 }
 0x253   :  { %v429_v14 = vadd.f32 %v1034_v12, %v428_v13 }
 0x255   :  { %v432_v15 = vmul.f32 0.01, %v429_v14 }
 0x257   :  { %v433_v16 = vmax.f32 %v429_v14, %v432_v15 }
 0x259   :  { %v443_v17 = vpack.c.bf16 %v433_v16, %v433_v16 }
 0x25a   :  { %v430_v18 = vpop.f32.mrf.mxu3 }
 0x25b   :  { %898 = vmatmul.msk.bf16.vlgmr.msrb.gmra.mxu0 %vm375_vm0, %v443_v17 }
 0x262   :  { %v644_v19 = vpop.f32.mrf.mxu3 }
 0x263   :  { %v685_v20 = vmul.f32 %v644_v19, %v393_v55  ;;  %v922_v55 = vor.u32 %v1003_v52, %v919_v53 }
 0x265   :  { %v686_v23 = vsel %vm415_vm1, %v685_v20, 0.0  ;;  %610 = vmatpush.bf16.msrb.mxu2 %v922_v55 }
 0x266   :  { %687 = vadd.xlane.f32.xlu1 %v686_v23 }
 0x269   :  { %611 = vmatpush.bf16.msrb.mxu2 %v914_v61 }
 0x26a   :  { %v664_v24 = vpop.f32.mrf.mxu3 }
 0x26b   :  { %v696_v25 = vsel %vm415_vm1, %v664_v24, 0.0 }
 0x26c   :  { %697 = vadd.xlane.f32.xlu2 %v696_v25 }
 0x26d   :  { %612 = vmatpush.bf16.msrb.mxu2 %v906_v3 }
 0x2c2   :  { %v677_v4 = vpop.xlane.xlu1 %676 }
 0x2c3   :  { %v678_v5 = vrot.slane %v677_v4, 4 }
 0x2c5   :  { %v679_v6 = vadd.f32 %v678_v5, %v677_v4 }
 0x2c7   :  { %v680_v7 = vrot.slane %v679_v6, 2 }
 0x2c9   :  { %v681_v8 = vadd.f32 %v680_v7, %v679_v6 }
 0x2cb   :  { %v682_v9 = vrot.slane %v681_v8, 1 }
 0x2cd   :  { %v683_v10 = vadd.f32 %v682_v9, %v681_v8 }
 0x2cf   :  { %1015 = vpush %v683_v10 }
 0x2d8   :  { %v483_v12 = vpop.f32.mrf.mxu0 }
 0x2d9   :  { %v484_v13 = vadd.f32 %v1035_v11, %v483_v12  ;;  %v688_v14 = vpop.xlane.xlu1 %687 }
 0x2da   :  { %v689_v15 = vrot.slane %v688_v14, 4 }
 0x2db   :  { %v487_v16 = vmul.f32 0.01, %v484_v13 }
 0x2dc   :  { %v690_v17 = vadd.f32 %v689_v15, %v688_v14 }
 0x2dd   :  { %v488_v18 = vmax.f32 %v484_v13, %v487_v16 }
 0x2de   :  { %v691_v19 = vrot.slane %v690_v17, 2 }
 0x2df   :  { %v506_v20 = vpack.c.bf16 %v488_v18, %v488_v18  ;;  %v698_v23 = vpop.xlane.xlu2 %697 }
 0x2e0   :  { %v692_v24 = vadd.f32 %v691_v19, %v690_v17  ;;  %v699_v25 = vrot.slane %v698_v23, 4  ;;  %v485_v26 = vpop.f32.mrf.mxu0 }
 0x2e1   :  { %600 = vmatmul.bf16.vlgmr.msrb.gmra.mxu1 %v506_v20  ;;  %613 = vmatmul.bf16.vlgmr.msrb.gmra.mxu2 %v506_v20 }
 0x2e2   :  { %v700_v27 = vadd.f32 %v699_v25, %v698_v23  ;;  %v693_v28 = vrot.slane %v692_v24, 1 }
 0x2e4   :  { %v701_v29 = vrot.slane %v700_v27, 2  ;;  %v694_v30 = vadd.f32 %v693_v28, %v692_v24 }
 0x2e6   :  { %1017 = vpush %v694_v30  ;;  %v702_v31 = vadd.f32 %v701_v29, %v700_v27 }
 0x2e8   :  { %v703_v32 = vrot.slane %v702_v31, 1 }
 0x2ea   :  { %v704_v33 = vadd.f32 %v703_v32, %v702_v31 }
 0x2ec   :  { %1019 = vpush %v704_v33 }
 0x300   :  { %s1016_s12 = spop %1015 }
 0x317   :  { %s1018_s5 = spop %1017 }
 0x318   :  { %s706_s28 = smul.f32 2.0, %s1018_s5 }
 0x31a   :  { %s707_s29 = ssub.f32 %s1016_s12, %s706_s28 }
 0x31d   :  { %s1020_s30 = spop %1019 }
 0x31e   :  { %s708_s4 = sadd.f32 %s1020_s30, %s707_s29 }
 0x320   :  { %710 = sst [smem:[#allocation7]] %s708_s4 }
 0x321   :  { %737 = dma.smem_to_hbm %s1122_s9, 16, %s735_s6, [#allocation4]  }
 0x35e   :  { %v601_v36 = vpop.f32.mrf.mxu1 }
 0x35f   :  { %v602_v37 = vadd.f32 %v601_v36, %v508_v35 }
 0x361   :  { %v618_v38 = vmul.f32 0.01, %v602_v37 }
 0x363   :  { %v620_v40 = vmax.f32 %v602_v37, %v618_v38 }
 0x364   :  { %v614_v41 = vpop.f32.mrf.mxu2 }
 0x365   :  { %v615_v42 = vadd.f32 %v614_v41, %v509_v39  ;;  %v711_v44 = vsub.f32 %v1233_v21, %v620_v40 }
 0x366   :  { %v603_v43 = vpop.f32.mrf.mxu1 }
 0x367   :  { %v619_v45 = vmul.f32 0.01, %v615_v42  ;;  %v713_v50 = vmul.f32 %v711_v44, %v90_v46 }
 0x369   :  { %v621_v47 = vmax.f32 %v615_v42, %v619_v45  ;;  %v715_v53 = vmul.f32 %v713_v50, %v713_v50 }
 0x36b   :  { %v712_v49 = vsub.f32 %v1238_v22, %v621_v47 }
 0x36c   :  { %v616_v51 = vpop.f32.mrf.mxu2 }
 0x36d   :  { %v714_v52 = vmul.f32 %v712_v49, %v91_v48 }
 0x36f   :  { %v716_v54 = vmul.f32 %v714_v52, %v714_v52 }
 0x371   :  { %v717_v55 = vadd.f32 %v716_v54, %v715_v53 }
 0x373   :  { %718 = vadd.xlane.f32.xlu2 %v717_v55 }
 0x3e6   :  { %v719_v21 = vpop.xlane.xlu2 %718 }
 0x3e7   :  { %v720_v56 = vrot.slane %v719_v21, 4 }
 0x3e9   :  { %v721_v57 = vadd.f32 %v720_v56, %v719_v21 }
 0x3eb   :  { %v722_v58 = vrot.slane %v721_v57, 2 }
 0x3ed   :  { %v723_v59 = vadd.f32 %v722_v58, %v721_v57 }
 0x3ef   :  { %v724_v22 = vrot.slane %v723_v59, 1 }
 0x3f1   :  { %v725_v60 = vadd.f32 %v724_v22, %v723_v59 }
 0x3f3   :  { %1021 = vpush %v725_v60 }
 0x424   :  { %s1022_s21 = spop %1021 }
 0x425   :  { %728 = sst [smem:[#allocation8]] %s1022_s21 }
 0x426   :  { %746 = dma.smem_to_hbm %s1123_s22, 16, %s744_s20, [#allocation9]  }
 0x427   :  { %1112 = dma.done.wait [#allocation4], 16  }
 0x428   :  { %1113 = vsyncadd [#allocation4], 4294967280 }
 0x429   :  { %1114 = dma.done.wait [#allocation9], 16  }
 0x42a   :  { %1115 = vsyncadd [#allocation9], 4294967280 }
 0x42b   :  { %755 = sfence }
 0x42c   :  { %756 = vsyncpa [#allocation3], 1 }
 0x42d   :  { %757 = vsyncpa [#allocation6], 1 }
 0x42e   :  { %758 = vsyncpa [#allocation4], 1 }
 0x42f   :  { %759 = vsyncpa [#allocation9], 1 }

</bundles_post_ra>
